<compile_context>
chip_gen: v7x
topology: tpu7x:2x2x1
jax: 0.10.0
libtpu: 0.0.40
codegen_flags: <defaults>
</compile_context>

<pallas_src>
import functools

import jax
import jax.numpy as jnp
from jax import lax
from jax.experimental import pallas as pl
from jax.experimental.pallas import tpu as pltpu

_LANE = 128
_SUBLANE = 8


def _round_up(n, m):
    return ((n + m - 1) // m) * m


def _cdiv(a, b):
    return -(-a // b)


def _tpu_vmem_info(two_tc_override=None):
    """Generation-aware VMEM capacity + (heuristic) 2-TensorCore detection."""
    vmem_cap = None
    try:
        info = pltpu.get_tpu_info()
        vmem_cap = int(getattr(info, "vmem_capacity_bytes", 0)) or None
    except Exception:
        vmem_cap = None
    if vmem_cap is None:
        vmem_cap = 64 * 1024 * 1024          # conservative, valid on every gen
        two_tc = False
    else:
        # v7x has 64 MiB VMEM per TC and 2 TCs/chip; v5e/v6e have 128 MiB, 1 TC.
        two_tc = vmem_cap <= 64 * 1024 * 1024
    if two_tc_override is not None:
        two_tc = bool(two_tc_override)
    return vmem_cap, two_tc


# ------------------------------ parameter prep ------------------------------

def init_mlp_out_params(key, d_feature, d_out, block_num, zero_fc1=True):
    """Mirrors the PyTorch module init (fc_0 kaiming-normal fan_in, bias 0;
    fc_1 zero weight, zero bias; lin_out small normal).  Weights are stored
    pre-transposed as [in, out].  zero_fc1=False swaps the zero fc_1 weights
    for small random ones so numerical checks exercise the full block math."""
    k0, k1, kout = jax.random.split(key, 3)
    std0 = (2.0 / d_feature) ** 0.5
    w0 = std0 * jax.random.normal(k0, (block_num, d_feature, d_feature), jnp.float32)
    b0 = jnp.zeros((block_num, 1, d_feature), jnp.float32)
    if zero_fc1:
        w1 = jnp.zeros((block_num, d_feature, d_feature), jnp.float32)
    else:
        w1 = (1.0 / d_feature ** 0.5) * jax.random.normal(
            k1, (block_num, d_feature, d_feature), jnp.float32)
    b1 = jnp.zeros((block_num, 1, d_feature), jnp.float32)
    wout = (1.0 / d_feature ** 0.5) * jax.random.normal(
        kout, (d_feature, d_out), jnp.float32)
    bout = jnp.zeros((1, d_out), jnp.float32)
    return dict(w0=w0, b0=b0, w1=w1, b1=b1, wout=wout, bout=bout)


def prepare_mlp_out_params(params, weight_dtype=jnp.bfloat16):
    """One-time prep: zero-pad D and d_out to lane multiples (128) and cast the
    matmul weights (w0/w1/wout) to `weight_dtype` (bf16 default perf path;
    None keeps f32).  Biases stay f32.  Do this once at param load so per-call
    forwards do not pay extra HBM copies/casts."""
    w0, b0, w1, b1, wout, bout = (params["w0"], params["b0"], params["w1"],
                                  params["b1"], params["wout"], params["bout"])
    block_num, D, _ = w0.shape
    d_out = wout.shape[1]
    d_pad = _round_up(max(D, _LANE), _LANE)
    d_out_pad = _round_up(max(d_out, _LANE), _LANE)

    pd, po = d_pad - D, d_out_pad - d_out
    if pd:
        w0 = jnp.pad(w0, ((0, 0), (0, pd), (0, pd)))
        w1 = jnp.pad(w1, ((0, 0), (0, pd), (0, pd)))
        b0 = jnp.pad(b0, ((0, 0), (0, 0), (0, pd)))
        b1 = jnp.pad(b1, ((0, 0), (0, 0), (0, pd)))
        wout = jnp.pad(wout, ((0, pd), (0, 0)))
    if po:
        wout = jnp.pad(wout, ((0, 0), (0, po)))
        bout = jnp.pad(bout, ((0, 0), (0, po)))

    if weight_dtype is not None:
        w0 = w0.astype(weight_dtype)
        w1 = w1.astype(weight_dtype)
        wout = wout.astype(weight_dtype)

    return dict(w0=w0, b0=b0, w1=w1, b1=b1, wout=wout, bout=bout,
                d_feature=D, d_out=d_out, _prepared=True)


# --------------------------------- kernels ----------------------------------

def _mlp_out_resident_kernel(x_ref, w0_ref, b0_ref, w1_ref, b1_ref,
                             wout_ref, bout_ref, o_ref,
                             *, block_num, interleave_halves):
    """Whole MLPOut forward for one row-tile; all weights resident in VMEM."""

    def dot(a, w):
        # Cast the activation operand to the (possibly bf16) weight dtype;
        # always accumulate in f32 on the MXU.
        return jnp.dot(a.astype(w.dtype), w, preferred_element_type=jnp.float32)

    def block_body(b, x):
        res = jnp.maximum(dot(x, w0_ref[b]) + b0_ref[b], 0.0)     # ReLU(x@W0+b0)
        res = dot(res, w1_ref[b]) + b1_ref[b]
        return jnp.maximum(x + res, 0.0)                          # ReLU(x + res)

    def run_chain(xs):
        # xs: tuple of independent row halves interleaved through the block
        # chain so the MXU stays fed while a dependent result drains (MRF).
        if block_num <= 16:
            for b in range(block_num):                 # full unroll: LLO visibility
                xs = tuple(block_body(b, x) for x in xs)
            return xs
        def body(b, xs):
            return tuple(block_body(b, x) for x in xs)
        return lax.fori_loop(0, block_num, body, xs, unroll=2)

    rt = x_ref.shape[0]
    if interleave_halves:
        half = rt // 2
        xs = (x_ref[pl.ds(0, half), :].astype(jnp.float32),
              x_ref[pl.ds(half, half), :].astype(jnp.float32))
    else:
        xs = (x_ref[...].astype(jnp.float32),)

    xs = run_chain(xs)
    outs = tuple(dot(x, wout_ref[...]) + bout_ref[...] for x in xs)

    if interleave_halves:
        half = rt // 2
        o_ref[pl.ds(0, half), :] = outs[0].astype(o_ref.dtype)
        o_ref[pl.ds(half, half), :] = outs[1].astype(o_ref.dtype)
    else:
        o_ref[...] = outs[0].astype(o_ref.dtype)


def _mlp_out_stream_kernel(x_ref, w0_ref, b0_ref, w1_ref, b1_ref,
                           wout_ref, bout_ref, o_ref, x_carry):
    """Weight-streaming variant: grid=(row_tiles, block_num).  Per-block weights
    are pipelined from HBM; x is carried across the block axis in f32 VMEM."""
    b = pl.program_id(1)

    def dot(a, w):
        return jnp.dot(a.astype(w.dtype), w, preferred_element_type=jnp.float32)

    @pl.when(b == 0)
    def _():
        x_carry[...] = x_ref[...].astype(jnp.float32)

    x = x_carry[...]
    res = jnp.maximum(dot(x, w0_ref[0]) + b0_ref[0], 0.0)
    res = dot(res, w1_ref[0]) + b1_ref[0]
    x = jnp.maximum(x + res, 0.0)
    x_carry[...] = x

    @pl.when(b == pl.num_programs(1) - 1)
    def _():
        out = dot(x, wout_ref[...]) + bout_ref[...]
        o_ref[...] = out.astype(o_ref.dtype)


# --------------------------------- wrapper ----------------------------------

def mlp_out_forward(x, params, *, row_tile=256, weight_dtype=jnp.bfloat16,
                    force_streaming=False, two_tc=None):
    """MLPOut forward.  x: [N, d_feature].

    `params` may be raw (from init_mlp_out_params) or pre-prepared via
    prepare_mlp_out_params (preferred: pad/cast once, not per call).
    """
    if not params.get("_prepared", False):
        params = prepare_mlp_out_params(params, weight_dtype=weight_dtype)

    w0, b0, w1, b1 = params["w0"], params["b0"], params["w1"], params["b1"]
    wout, bout = params["wout"], params["bout"]
    D, d_out = params["d_feature"], params["d_out"]

    N, Dx = x.shape
    assert Dx == D, f"x feature dim {Dx} != params d_feature {D}"
    block_num, d_pad, _ = w0.shape
    d_out_pad = wout.shape[1]
    out_dtype = x.dtype
    itemsize = jnp.dtype(out_dtype).itemsize
    wsize = jnp.dtype(w0.dtype).itemsize

    vmem_cap, two_tc = _tpu_vmem_info(two_tc)
    vmem_cap_limit = int(0.875 * vmem_cap)        # leave compiler/internal headroom

    # ---- N-driven row tiling: choose step count first, then fit rt to N. ----
    target = max(_SUBLANE, row_tile)
    num_steps = max(1, _cdiv(N, target))
    if two_tc and num_steps % 2:                  # even steps so 2 TCs split evenly
        num_steps += 1
    rt = _round_up(_cdiv(N, num_steps), _SUBLANE)
    n_pad = num_steps * rt
    if n_pad != N or d_pad != D:
        x_p = jnp.pad(x, ((0, n_pad - N), (0, d_pad - D)))
    else:
        x_p = x

    # ---- VMEM budgets (bytes). Single-buffered weights counted once. ----
    block_w_bytes = 2 * d_pad * d_pad * wsize + 2 * d_pad * 4       # W0+W1 (+f32 biases)
    out_w_bytes = d_pad * d_out_pad * wsize + d_out_pad * 4         # Wout + bout
    act_bytes = 2 * (rt * d_pad + rt * d_out_pad) * itemsize        # double-buffered x/out
    scratch_bytes = 4 * rt * d_pad * 4 + 2 * 1024 * 1024            # f32 temps + headroom

    resident_budget = block_num * block_w_bytes + out_w_bytes + act_bytes + scratch_bytes
    stream_budget = (2 * block_w_bytes + out_w_bytes + act_bytes
                     + rt * d_pad * 4 + scratch_bytes)

    use_streaming = (force_streaming or resident_budget > vmem_cap_limit) and block_num > 0

    flops = block_num * 4 * n_pad * d_pad * d_pad + 2 * n_pad * d_pad * d_out_pad
    resident = pl.Buffered(1)     # grid-invariant inputs: no double-buffer DMA

    if not use_streaming:
        interleave = (d_pad <= 256) and (rt >= 16) and (rt % 16 == 0)
        kernel = functools.partial(_mlp_out_resident_kernel,
                                   block_num=block_num,
                                   interleave_halves=interleave)
        vmem_limit = int(min(max(resident_budget, 32 * 1024 * 1024), vmem_cap_limit))
        cost = pl.CostEstimate(
            flops=flops, transcendentals=0,
            bytes_accessed=(x_p.nbytes + block_num * block_w_bytes + out_w_bytes
                            + n_pad * d_out_pad * itemsize))
        out_p = pl.pallas_call(
            kernel,
            out_shape=jax.ShapeDtypeStruct((n_pad, d_out_pad), out_dtype),
            grid_spec=pltpu.PrefetchScalarGridSpec(
                num_scalar_prefetch=0,
                grid=(num_steps,),
                in_specs=[
                    pl.BlockSpec((rt, d_pad), lambda i: (i, 0)),                   # x tile
                    pl.BlockSpec((block_num, d_pad, d_pad), lambda i: (0, 0, 0),
                                 pipeline_mode=resident),                          # W0 stack
                    pl.BlockSpec((block_num, 1, d_pad), lambda i: (0, 0, 0),
                                 pipeline_mode=resident),                          # b0 stack
                    pl.BlockSpec((block_num, d_pad, d_pad), lambda i: (0, 0, 0),
                                 pipeline_mode=resident),                          # W1 stack
                    pl.BlockSpec((block_num, 1, d_pad), lambda i: (0, 0, 0),
                                 pipeline_mode=resident),                          # b1 stack
                    pl.BlockSpec((d_pad, d_out_pad), lambda i: (0, 0),
                                 pipeline_mode=resident),                          # Wout
                    pl.BlockSpec((1, d_out_pad), lambda i: (0, 0),
                                 pipeline_mode=resident),                          # bout
                ],
                out_specs=pl.BlockSpec((rt, d_out_pad), lambda i: (i, 0)),
            ),
            compiler_params=pltpu.CompilerParams(
                dimension_semantics=("parallel",),
                vmem_limit_bytes=vmem_limit),
            cost_estimate=cost,
        )(x_p, w0, b0, w1, b1, wout, bout)
    else:
        vmem_limit = int(min(max(stream_budget, 32 * 1024 * 1024), vmem_cap_limit))
        cost = pl.CostEstimate(
            flops=flops, transcendentals=0,
            bytes_accessed=(num_steps * block_num * block_w_bytes + out_w_bytes
                            + x_p.nbytes + n_pad * d_out_pad * itemsize))
        out_p = pl.pallas_call(
            _mlp_out_stream_kernel,
            out_shape=jax.ShapeDtypeStruct((n_pad, d_out_pad), out_dtype),
            grid_spec=pltpu.PrefetchScalarGridSpec(
                num_scalar_prefetch=0,
                grid=(num_steps, block_num),                 # block axis last
                in_specs=[
                    pl.BlockSpec((rt, d_pad), lambda i, b: (i, 0)),                # x tile
                    pl.BlockSpec((1, d_pad, d_pad), lambda i, b: (b, 0, 0)),       # W0[b]
                    pl.BlockSpec((1, 1, d_pad), lambda i, b: (b, 0, 0)),           # b0[b]
                    pl.BlockSpec((1, d_pad, d_pad), lambda i, b: (b, 0, 0)),       # W1[b]
                    pl.BlockSpec((1, 1, d_pad), lambda i, b: (b, 0, 0)),           # b1[b]
                    pl.BlockSpec((d_pad, d_out_pad), lambda i, b: (0, 0),
                                 pipeline_mode=resident),                          # Wout
                    pl.BlockSpec((1, d_out_pad), lambda i, b: (0, 0),
                                 pipeline_mode=resident),                          # bout
                ],
                out_specs=pl.BlockSpec((rt, d_out_pad), lambda i, b: (i, 0)),
                scratch_shapes=[pltpu.VMEM((rt, d_pad), jnp.float32)],             # x carry
            ),
            compiler_params=pltpu.CompilerParams(
                dimension_semantics=("parallel", "arbitrary"),
                vmem_limit_bytes=vmem_limit),
            cost_estimate=cost,
        )(x_p, w0, b0, w1, b1, wout, bout)

    return out_p[:N, :d_out]


# ------------------------------ pure-JAX reference ---------------------------

def mlp_out_reference(x, params):
    """Pure-JAX reference (f32, highest matmul precision) for correctness."""
    hp = lax.Precision.HIGHEST
    block_num = params["w0"].shape[0]
    for b in range(block_num):
        res = jnp.maximum(
            jnp.dot(x, params["w0"][b], precision=hp) + params["b0"][b], 0.0)
        res = jnp.dot(res, params["w1"][b], precision=hp) + params["b1"][b]
        x = jnp.maximum(x + res, 0.0)
    return jnp.dot(x, params["wout"], precision=hp) + params["bout"]


if __name__ == "__main__":
    key = jax.random.PRNGKey(0)
    kx, kp = jax.random.split(key)

    N, d_feature, d_out, block_num = 16, 32, 8, 2
    x = jax.random.normal(kx, (N, d_feature), jnp.float32)
    # Non-zero fc_1 weights so the check exercises the full residual-block math
    # (the module's real init zeroes fc_1, which would hide matmul errors).
    params = init_mlp_out_params(kp, d_feature, d_out, block_num, zero_fc1=False)
    ref = mlp_out_reference(x, params)

    # 1) exact-numerics f32 path (weight-resident kernel)
    p_f32 = prepare_mlp_out_params(params, weight_dtype=None)
    out = jax.block_until_ready(mlp_out_forward(x, p_f32))
    assert out.shape == (N, d_out)
    assert jnp.allclose(out, ref, atol=1e-5, rtol=1e-5), "f32 resident mismatch"

    # 2) weight-streaming path (v7x / large-D fallback), f32 exact
    out_s = jax.block_until_ready(mlp_out_forward(x, p_f32, force_streaming=True))
    assert jnp.allclose(out_s, ref, atol=1e-5, rtol=1e-5), "f32 streaming mismatch"

    # 3) default perf path: bf16 weights, f32 accumulation (looser tolerance)
    p_bf16 = prepare_mlp_out_params(params)            # weight_dtype=bf16 default
    out_bf = jax.block_until_ready(mlp_out_forward(x, p_bf16))
    assert jnp.allclose(out_bf, ref, atol=1e-1, rtol=1e-1), "bf16 resident mismatch"

    print("KERNEL_OK")
</pallas_src>

<mosaic_0001>
module attributes {stable_mosaic.version = 11 : i64} {
  func.func @_mlp_out_resident_kernel(%arg0: i32, %arg1: memref<16x128xf32, #tpu.memory_space<vmem>>, %arg2: memref<2x128x128xf32, #tpu.memory_space<vmem>>, %arg3: memref<2x1x128xf32, #tpu.memory_space<vmem>>, %arg4: memref<2x128x128xf32, #tpu.memory_space<vmem>>, %arg5: memref<2x1x128xf32, #tpu.memory_space<vmem>>, %arg6: memref<128x128xf32, #tpu.memory_space<vmem>>, %arg7: memref<1x128xf32, #tpu.memory_space<vmem>>, %arg8: memref<16x128xf32, #tpu.memory_space<vmem>>) attributes {dimension_semantics = [#tpu.dimension_semantics<parallel>], iteration_bounds = array<i64: 1>, scalar_prefetch = 0 : i64, scratch_operands = 0 : i64, tpu.core_type = #tpu.core_type<tc>, window_params = [{transform_indices = @transform_0, window_bounds = array<i64: 16, 128>}, {pipeline_mode = #tpu.pipeline_mode<synchronous>, transform_indices = @transform_1, window_bounds = array<i64: 2, 128, 128>}, {pipeline_mode = #tpu.pipeline_mode<synchronous>, transform_indices = @transform_2, window_bounds = array<i64: 2, 1, 128>}, {pipeline_mode = #tpu.pipeline_mode<synchronous>, transform_indices = @transform_3, window_bounds = array<i64: 2, 128, 128>}, {pipeline_mode = #tpu.pipeline_mode<synchronous>, transform_indices = @transform_4, window_bounds = array<i64: 2, 1, 128>}, {pipeline_mode = #tpu.pipeline_mode<synchronous>, transform_indices = @transform_5, window_bounds = array<i64: 128, 128>}, {pipeline_mode = #tpu.pipeline_mode<synchronous>, transform_indices = @transform_6, window_bounds = array<i64: 1, 128>}, {transform_indices = @transform_7, window_bounds = array<i64: 16, 128>}]} {
    %c0 = arith.constant 0 : index
    %c0_0 = arith.constant 0 : index
    %0 = vector.load %arg1[%c0, %c0_0] : memref<16x128xf32, #tpu.memory_space<vmem>>, vector<8x128xf32>
    %c8 = arith.constant 8 : index
    %c0_1 = arith.constant 0 : index
    %1 = vector.load %arg1[%c8, %c0_1] : memref<16x128xf32, #tpu.memory_space<vmem>>, vector<8x128xf32>
    %c0_2 = arith.constant 0 : index
    %c0_3 = arith.constant 0 : index
    %c0_4 = arith.constant 0 : index
    %2 = vector.load %arg2[%c0_2, %c0_3, %c0_4] : memref<2x128x128xf32, #tpu.memory_space<vmem>>, vector<1x128x128xf32>
    %3 = vector.shape_cast %2 : vector<1x128x128xf32> to vector<128x128xf32>
    %cst = arith.constant dense<0.000000e+00> : vector<8x128xf32>
    %4 = tpu.matmul %0, %3, %cst {dimension_numbers = #tpu.dot_dimension_numbers<[1], [0], [0], [1], [0, 0, 1, 1], [], []>} : vector<8x128xf32>, vector<128x128xf32>, vector<8x128xf32> -> vector<8x128xf32>
    %c0_5 = arith.constant 0 : index
    %c0_6 = arith.constant 0 : index
    %c0_7 = arith.constant 0 : index
    %5 = vector.load %arg3[%c0_5, %c0_6, %c0_7] : memref<2x1x128xf32, #tpu.memory_space<vmem>>, vector<1x1x128xf32>
    %6 = vector.shape_cast %5 : vector<1x1x128xf32> to vector<1x128xf32>
    %7 = vector.broadcast %6 : vector<1x128xf32> to vector<8x128xf32>
    %8 = arith.addf %4, %7 : vector<8x128xf32>
    %cst_8 = arith.constant 0.000000e+00 : f32
    %9 = vector.broadcast %cst_8 : f32 to vector<8x128xf32>
    %10 = arith.maximumf %8, %9 : vector<8x128xf32>
    %c0_9 = arith.constant 0 : index
    %c0_10 = arith.constant 0 : index
    %c0_11 = arith.constant 0 : index
    %11 = vector.load %arg4[%c0_9, %c0_10, %c0_11] : memref<2x128x128xf32, #tpu.memory_space<vmem>>, vector<1x128x128xf32>
    %12 = vector.shape_cast %11 : vector<1x128x128xf32> to vector<128x128xf32>
    %cst_12 = arith.constant dense<0.000000e+00> : vector<8x128xf32>
    %13 = tpu.matmul %10, %12, %cst_12 {dimension_numbers = #tpu.dot_dimension_numbers<[1], [0], [0], [1], [0, 0, 1, 1], [], []>} : vector<8x128xf32>, vector<128x128xf32>, vector<8x128xf32> -> vector<8x128xf32>
    %c0_13 = arith.constant 0 : index
    %c0_14 = arith.constant 0 : index
    %c0_15 = arith.constant 0 : index
    %14 = vector.load %arg5[%c0_13, %c0_14, %c0_15] : memref<2x1x128xf32, #tpu.memory_space<vmem>>, vector<1x1x128xf32>
    %15 = vector.shape_cast %14 : vector<1x1x128xf32> to vector<1x128xf32>
    %16 = vector.broadcast %15 : vector<1x128xf32> to vector<8x128xf32>
    %17 = arith.addf %13, %16 : vector<8x128xf32>
    %18 = arith.addf %0, %17 : vector<8x128xf32>
    %cst_16 = arith.constant 0.000000e+00 : f32
    %19 = vector.broadcast %cst_16 : f32 to vector<8x128xf32>
    %20 = arith.maximumf %18, %19 : vector<8x128xf32>
    %c0_17 = arith.constant 0 : index
    %c0_18 = arith.constant 0 : index
    %c0_19 = arith.constant 0 : index
    %21 = vector.load %arg2[%c0_17, %c0_18, %c0_19] : memref<2x128x128xf32, #tpu.memory_space<vmem>>, vector<1x128x128xf32>
    %22 = vector.shape_cast %21 : vector<1x128x128xf32> to vector<128x128xf32>
    %cst_20 = arith.constant dense<0.000000e+00> : vector<8x128xf32>
    %23 = tpu.matmul %1, %22, %cst_20 {dimension_numbers = #tpu.dot_dimension_numbers<[1], [0], [0], [1], [0, 0, 1, 1], [], []>} : vector<8x128xf32>, vector<128x128xf32>, vector<8x128xf32> -> vector<8x128xf32>
    %c0_21 = arith.constant 0 : index
    %c0_22 = arith.constant 0 : index
    %c0_23 = arith.constant 0 : index
    %24 = vector.load %arg3[%c0_21, %c0_22, %c0_23] : memref<2x1x128xf32, #tpu.memory_space<vmem>>, vector<1x1x128xf32>
    %25 = vector.shape_cast %24 : vector<1x1x128xf32> to vector<1x128xf32>
    %26 = vector.broadcast %25 : vector<1x128xf32> to vector<8x128xf32>
    %27 = arith.addf %23, %26 : vector<8x128xf32>
    %cst_24 = arith.constant 0.000000e+00 : f32
    %28 = vector.broadcast %cst_24 : f32 to vector<8x128xf32>
    %29 = arith.maximumf %27, %28 : vector<8x128xf32>
    %c0_25 = arith.constant 0 : index
    %c0_26 = arith.constant 0 : index
    %c0_27 = arith.constant 0 : index
    %30 = vector.load %arg4[%c0_25, %c0_26, %c0_27] : memref<2x128x128xf32, #tpu.memory_space<vmem>>, vector<1x128x128xf32>
    %31 = vector.shape_cast %30 : vector<1x128x128xf32> to vector<128x128xf32>
    %cst_28 = arith.constant dense<0.000000e+00> : vector<8x128xf32>
    %32 = tpu.matmul %29, %31, %cst_28 {dimension_numbers = #tpu.dot_dimension_numbers<[1], [0], [0], [1], [0, 0, 1, 1], [], []>} : vector<8x128xf32>, vector<128x128xf32>, vector<8x128xf32> -> vector<8x128xf32>
    %c0_29 = arith.constant 0 : index
    %c0_30 = arith.constant 0 : index
    %c0_31 = arith.constant 0 : index
    %33 = vector.load %arg5[%c0_29, %c0_30, %c0_31] : memref<2x1x128xf32, #tpu.memory_space<vmem>>, vector<1x1x128xf32>
    %34 = vector.shape_cast %33 : vector<1x1x128xf32> to vector<1x128xf32>
    %35 = vector.broadcast %34 : vector<1x128xf32> to vector<8x128xf32>
    %36 = arith.addf %32, %35 : vector<8x128xf32>
    %37 = arith.addf %1, %36 : vector<8x128xf32>
    %cst_32 = arith.constant 0.000000e+00 : f32
    %38 = vector.broadcast %cst_32 : f32 to vector<8x128xf32>
    %39 = arith.maximumf %37, %38 : vector<8x128xf32>
    %c1 = arith.constant 1 : index
    %c0_33 = arith.constant 0 : index
    %c0_34 = arith.constant 0 : index
    %40 = vector.load %arg2[%c1, %c0_33, %c0_34] : memref<2x128x128xf32, #tpu.memory_space<vmem>>, vector<1x128x128xf32>
    %41 = vector.shape_cast %40 : vector<1x128x128xf32> to vector<128x128xf32>
    %cst_35 = arith.constant dense<0.000000e+00> : vector<8x128xf32>
    %42 = tpu.matmul %20, %41, %cst_35 {dimension_numbers = #tpu.dot_dimension_numbers<[1], [0], [0], [1], [0, 0, 1, 1], [], []>} : vector<8x128xf32>, vector<128x128xf32>, vector<8x128xf32> -> vector<8x128xf32>
    %c1_36 = arith.constant 1 : index
    %c0_37 = arith.constant 0 : index
    %c0_38 = arith.constant 0 : index
    %43 = vector.load %arg3[%c1_36, %c0_37, %c0_38] : memref<2x1x128xf32, #tpu.memory_space<vmem>>, vector<1x1x128xf32>
    %44 = vector.shape_cast %43 : vector<1x1x128xf32> to vector<1x128xf32>
    %45 = vector.broadcast %44 : vector<1x128xf32> to vector<8x128xf32>
    %46 = arith.addf %42, %45 : vector<8x128xf32>
    %cst_39 = arith.constant 0.000000e+00 : f32
    %47 = vector.broadcast %cst_39 : f32 to vector<8x128xf32>
    %48 = arith.maximumf %46, %47 : vector<8x128xf32>
    %c1_40 = arith.constant 1 : index
    %c0_41 = arith.constant 0 : index
    %c0_42 = arith.constant 0 : index
    %49 = vector.load %arg4[%c1_40, %c0_41, %c0_42] : memref<2x128x128xf32, #tpu.memory_space<vmem>>, vector<1x128x128xf32>
    %50 = vector.shape_cast %49 : vector<1x128x128xf32> to vector<128x128xf32>
    %cst_43 = arith.constant dense<0.000000e+00> : vector<8x128xf32>
    %51 = tpu.matmul %48, %50, %cst_43 {dimension_numbers = #tpu.dot_dimension_numbers<[1], [0], [0], [1], [0, 0, 1, 1], [], []>} : vector<8x128xf32>, vector<128x128xf32>, vector<8x128xf32> -> vector<8x128xf32>
    %c1_44 = arith.constant 1 : index
    %c0_45 = arith.constant 0 : index
    %c0_46 = arith.constant 0 : index
    %52 = vector.load %arg5[%c1_44, %c0_45, %c0_46] : memref<2x1x128xf32, #tpu.memory_space<vmem>>, vector<1x1x128xf32>
    %53 = vector.shape_cast %52 : vector<1x1x128xf32> to vector<1x128xf32>
    %54 = vector.broadcast %53 : vector<1x128xf32> to vector<8x128xf32>
    %55 = arith.addf %51, %54 : vector<8x128xf32>
    %56 = arith.addf %20, %55 : vector<8x128xf32>
    %cst_47 = arith.constant 0.000000e+00 : f32
    %57 = vector.broadcast %cst_47 : f32 to vector<8x128xf32>
    %58 = arith.maximumf %56, %57 : vector<8x128xf32>
    %c1_48 = arith.constant 1 : index
    %c0_49 = arith.constant 0 : index
    %c0_50 = arith.constant 0 : index
    %59 = vector.load %arg2[%c1_48, %c0_49, %c0_50] : memref<2x128x128xf32, #tpu.memory_space<vmem>>, vector<1x128x128xf32>
    %60 = vector.shape_cast %59 : vector<1x128x128xf32> to vector<128x128xf32>
    %cst_51 = arith.constant dense<0.000000e+00> : vector<8x128xf32>
    %61 = tpu.matmul %39, %60, %cst_51 {dimension_numbers = #tpu.dot_dimension_numbers<[1], [0], [0], [1], [0, 0, 1, 1], [], []>} : vector<8x128xf32>, vector<128x128xf32>, vector<8x128xf32> -> vector<8x128xf32>
    %c1_52 = arith.constant 1 : index
    %c0_53 = arith.constant 0 : index
    %c0_54 = arith.constant 0 : index
    %62 = vector.load %arg3[%c1_52, %c0_53, %c0_54] : memref<2x1x128xf32, #tpu.memory_space<vmem>>, vector<1x1x128xf32>
    %63 = vector.shape_cast %62 : vector<1x1x128xf32> to vector<1x128xf32>
    %64 = vector.broadcast %63 : vector<1x128xf32> to vector<8x128xf32>
    %65 = arith.addf %61, %64 : vector<8x128xf32>
    %cst_55 = arith.constant 0.000000e+00 : f32
    %66 = vector.broadcast %cst_55 : f32 to vector<8x128xf32>
    %67 = arith.maximumf %65, %66 : vector<8x128xf32>
    %c1_56 = arith.constant 1 : index
    %c0_57 = arith.constant 0 : index
    %c0_58 = arith.constant 0 : index
    %68 = vector.load %arg4[%c1_56, %c0_57, %c0_58] : memref<2x128x128xf32, #tpu.memory_space<vmem>>, vector<1x128x128xf32>
    %69 = vector.shape_cast %68 : vector<1x128x128xf32> to vector<128x128xf32>
    %cst_59 = arith.constant dense<0.000000e+00> : vector<8x128xf32>
    %70 = tpu.matmul %67, %69, %cst_59 {dimension_numbers = #tpu.dot_dimension_numbers<[1], [0], [0], [1], [0, 0, 1, 1], [], []>} : vector<8x128xf32>, vector<128x128xf32>, vector<8x128xf32> -> vector<8x128xf32>
    %c1_60 = arith.constant 1 : index
    %c0_61 = arith.constant 0 : index
    %c0_62 = arith.constant 0 : index
    %71 = vector.load %arg5[%c1_60, %c0_61, %c0_62] : memref<2x1x128xf32, #tpu.memory_space<vmem>>, vector<1x1x128xf32>
    %72 = vector.shape_cast %71 : vector<1x1x128xf32> to vector<1x128xf32>
    %73 = vector.broadcast %72 : vector<1x128xf32> to vector<8x128xf32>
    %74 = arith.addf %70, %73 : vector<8x128xf32>
    %75 = arith.addf %39, %74 : vector<8x128xf32>
    %cst_63 = arith.constant 0.000000e+00 : f32
    %76 = vector.broadcast %cst_63 : f32 to vector<8x128xf32>
    %77 = arith.maximumf %75, %76 : vector<8x128xf32>
    %c0_64 = arith.constant 0 : index
    %c0_65 = arith.constant 0 : index
    %78 = vector.load %arg6[%c0_64, %c0_65] : memref<128x128xf32, #tpu.memory_space<vmem>>, vector<128x128xf32>
    %cst_66 = arith.constant dense<0.000000e+00> : vector<8x128xf32>
    %79 = tpu.matmul %58, %78, %cst_66 {dimension_numbers = #tpu.dot_dimension_numbers<[1], [0], [0], [1], [0, 0, 1, 1], [], []>} : vector<8x128xf32>, vector<128x128xf32>, vector<8x128xf32> -> vector<8x128xf32>
    %c0_67 = arith.constant 0 : index
    %c0_68 = arith.constant 0 : index
    %80 = vector.load %arg7[%c0_67, %c0_68] : memref<1x128xf32, #tpu.memory_space<vmem>>, vector<1x128xf32>
    %81 = vector.broadcast %80 : vector<1x128xf32> to vector<8x128xf32>
    %82 = arith.addf %79, %81 : vector<8x128xf32>
    %c0_69 = arith.constant 0 : index
    %c0_70 = arith.constant 0 : index
    %83 = vector.load %arg6[%c0_69, %c0_70] : memref<128x128xf32, #tpu.memory_space<vmem>>, vector<128x128xf32>
    %cst_71 = arith.constant dense<0.000000e+00> : vector<8x128xf32>
    %84 = tpu.matmul %77, %83, %cst_71 {dimension_numbers = #tpu.dot_dimension_numbers<[1], [0], [0], [1], [0, 0, 1, 1], [], []>} : vector<8x128xf32>, vector<128x128xf32>, vector<8x128xf32> -> vector<8x128xf32>
    %c0_72 = arith.constant 0 : index
    %c0_73 = arith.constant 0 : index
    %85 = vector.load %arg7[%c0_72, %c0_73] : memref<1x128xf32, #tpu.memory_space<vmem>>, vector<1x128xf32>
    %86 = vector.broadcast %85 : vector<1x128xf32> to vector<8x128xf32>
    %87 = arith.addf %84, %86 : vector<8x128xf32>
    %c0_74 = arith.constant 0 : index
    %c0_75 = arith.constant 0 : index
    %88 = vector.load %arg8[%c0_74, %c0_75] : memref<16x128xf32, #tpu.memory_space<vmem>>, vector<8x128xf32>
    tpu.vector_store %arg8[%c0_74, %c0_75], %82 {strides = array<i32>} : memref<16x128xf32, #tpu.memory_space<vmem>>, vector<8x128xf32>,
    %c8_76 = arith.constant 8 : index
    %c0_77 = arith.constant 0 : index
    %89 = vector.load %arg8[%c8_76, %c0_77] : memref<16x128xf32, #tpu.memory_space<vmem>>, vector<8x128xf32>
    tpu.vector_store %arg8[%c8_76, %c0_77], %87 {strides = array<i32>} : memref<16x128xf32, #tpu.memory_space<vmem>>, vector<8x128xf32>,
    return
  }
  func.func @transform_0(%arg0: i32) -> (i32, i32) {
    %c0_i32 = arith.constant 0 : i32
    %c0_i32_0 = arith.constant 0 : i32
    return %arg0, %c0_i32 : i32, i32
  }
  func.func @transform_1(%arg0: i32) -> (i32, i32, i32) {
    %c0_i32 = arith.constant 0 : i32
    %c0_i32_0 = arith.constant 0 : i32
    %c0_i32_1 = arith.constant 0 : i32
    %c0_i32_2 = arith.constant 0 : i32
    return %c0_i32, %c0_i32_0, %c0_i32_1 : i32, i32, i32
  }
  func.func @transform_2(%arg0: i32) -> (i32, i32, i32) {
    %c0_i32 = arith.constant 0 : i32
    %c0_i32_0 = arith.constant 0 : i32
    %c0_i32_1 = arith.constant 0 : i32
    %c0_i32_2 = arith.constant 0 : i32
    return %c0_i32, %c0_i32_0, %c0_i32_1 : i32, i32, i32
  }
  func.func @transform_3(%arg0: i32) -> (i32, i32, i32) {
    %c0_i32 = arith.constant 0 : i32
    %c0_i32_0 = arith.constant 0 : i32
    %c0_i32_1 = arith.constant 0 : i32
    %c0_i32_2 = arith.constant 0 : i32
    return %c0_i32, %c0_i32_0, %c0_i32_1 : i32, i32, i32
  }
  func.func @transform_4(%arg0: i32) -> (i32, i32, i32) {
    %c0_i32 = arith.constant 0 : i32
    %c0_i32_0 = arith.constant 0 : i32
    %c0_i32_1 = arith.constant 0 : i32
    %c0_i32_2 = arith.constant 0 : i32
    return %c0_i32, %c0_i32_0, %c0_i32_1 : i32, i32, i32
  }
  func.func @transform_5(%arg0: i32) -> (i32, i32) {
    %c0_i32 = arith.constant 0 : i32
    %c0_i32_0 = arith.constant 0 : i32
    %c0_i32_1 = arith.constant 0 : i32
    return %c0_i32, %c0_i32_0 : i32, i32
  }
  func.func @transform_6(%arg0: i32) -> (i32, i32) {
    %c0_i32 = arith.constant 0 : i32
    %c0_i32_0 = arith.constant 0 : i32
    %c0_i32_1 = arith.constant 0 : i32
    return %c0_i32, %c0_i32_0 : i32, i32
  }
  func.func @transform_7(%arg0: i32) -> (i32, i32) {
    %c0_i32 = arith.constant 0 : i32
    %c0_i32_0 = arith.constant 0 : i32
    return %arg0, %c0_i32 : i32, i32
  }
}

</mosaic_0001>

<bundles_post_ra>
// kernel: tpu_custom_call.1
= control target key start
LH: loop header
LB: loop body
LE: loop exit
PB: predicated region body
PF: predicated region fallthrough
CT: control target
= control target key end

     0   :  { %12 = vsyncpa [#allocation3], 0  ;;  %s2207_s0 = inlined_call_operand.hbm [shape: f32[16,128], index: 0, kind: input, shape index: {}]   ;;  %s2208_s1 = inlined_call_operand.hbm [shape: f32[2,128,128], index: 1, kind: input, shape index: {}]   ;;  %s2209_s2 = inlined_call_operand.vmem [shape: f32[2,1,128], index: 2, kind: input, shape index: {}]   ;;  %s2210_s3 = inlined_call_operand.hbm [shape: f32[2,128,128], index: 3, kind: input, shape index: {}]   ;;  %s2211_s4 = inlined_call_operand.vmem [shape: f32[2,1,128], index: 4, kind: input, shape index: {}]   ;;  %s2212_s5 = inlined_call_operand.hbm [shape: f32[128,128], index: 5, kind: input, shape index: {}]   ;;  %s2213_s6 = inlined_call_operand.vmem [shape: f32[1,128], index: 6, kind: input, shape index: {}]   ;;  %s2214_s7 = inlined_call_operand.hbm [shape: f32[16,128], index: 7, kind: output, shape index: {}]  }
   0x1   :  { %13 = vsyncpa [#allocation6], 0 }
   0x2   :  { %14 = vsyncpa [#allocation9], 0 }
   0x3   :  { %15 = vsyncpa [#allocation4], 0  ;;  %s1831_s24 = smov [#allocation5]   ;;  %s1832_s26 = smov [#allocation2]  }
   0x4   :  { %s33_s25 = sshll.u32 %s1831_s24, 4  ;;  %s21_s27 = sshll.u32 %s1832_s26, 4  ;;  %s34_s25 = int_to_ptr.vmem [resolvable:$true] %s33_s25  ;;  %s1881_s27 = int_to_ptr.vmem [resolvable:$true] %s21_s27 }
   0x5   :  { %s1713_s30 = scalar_lea.hbm %s2208_s1, 4096 }
   0x6   :  { %p1714_p0 = scmp.ne.s32.totalorder %s2208_s1, %s1713_s30  ;;  %p1717_p1 = scmp.lt.u32.totalorder %s1713_s30, %s2208_s1 }
   0x8   :  { %p1719_p2 = pnand %p1717_p1, %p1714_p0 }
   0xa   :  { %1722 = shalt.err (!%p1719_p2)
}
   0xb   :  { %s1723_s12 = scalar_lea.vmem %s34_s25, 4096  ;;  %p1728_p4 = scmp.lt.s32.totalorder %s34_s25, %s34_s25 }
   0xc   :  { %p1724_p3 = scmp.ne.s32.totalorder %s34_s25, %s1723_s12  ;;  %p1729_p5 = scmp.lt.s32.totalorder %s1723_s12, %s1723_s12 }
   0xe   :  { %p1730_p6 = por %p1729_p5, %p1728_p4 }
  0x10   :  { %p1731_p7 = pnand %p1730_p6, %p1724_p3 }
  0x12   :  { %1734 = shalt.err (!%p1731_p7)
}
  0x13   :  { %s1833_s13 = smov 128   ;;  %s1834_s14 = smov 8  }
  0x14   :  { %39 = dma.hbm_to_vmem [thread:$0]  %s2208_s1, 4096, %s34_s25, [#allocation6], %s1833_s13, %s1833_s13, %s1834_s14  }
  0x15   :  { %s1735_s19 = scalar_lea.hbm %s2207_s0, 256 }
  0x16   :  { %p1736_p8 = scmp.ne.s32.totalorder %s2207_s0, %s1735_s19  ;;  %p1739_p9 = scmp.lt.u32.totalorder %s1735_s19, %s2207_s0 }
  0x18   :  { %p1741_p10 = pnand %p1739_p9, %p1736_p8 }
  0x1a   :  { %1744 = shalt.err (!%p1741_p10)
}
  0x1b   :  { %s1745_s24 = scalar_lea.vmem %s1881_s27, 256  ;;  %p1750_p12 = scmp.lt.s32.totalorder %s1881_s27, %s1881_s27 }
  0x1c   :  { %p1746_p11 = scmp.ne.s32.totalorder %s1881_s27, %s1745_s24  ;;  %p1751_p13 = scmp.lt.s32.totalorder %s1745_s24, %s1745_s24 }
  0x1e   :  { %p1752_p0 = por %p1751_p13, %p1750_p12 }
  0x20   :  { %p1753_p1 = pnand %p1752_p0, %p1746_p11 }
  0x22   :  { %1756 = shalt.err (!%p1753_p1)
}
  0x23   :  { %27 = dma.hbm_to_vmem [thread:$0]  %s2207_s0, 256, %s1881_s27, [#allocation3], %s1833_s13, %s1833_s13, %s1834_s14  }
  0x24   :  { %s1835_s26 = smov [#allocation7]   ;;  %s1836_s29 = smov [#allocation8]  }
  0x25   :  { %s47_s28 = sshll.u32 %s1835_s26, 4  ;;  %s61_s30 = sshll.u32 %s1836_s29, 4  ;;  %s48_s28 = int_to_ptr.vmem [resolvable:$true] %s47_s28  ;;  %s1918_s30 = int_to_ptr.vmem [resolvable:$true] %s61_s30 }
  0x26   :  { %s1757_s10 = scalar_lea.hbm %s2210_s3, 4096 }
  0x27   :  { %p1758_p2 = scmp.ne.s32.totalorder %s2210_s3, %s1757_s10  ;;  %p1761_p3 = scmp.lt.u32.totalorder %s1757_s10, %s2210_s3 }
  0x29   :  { %p1763_p4 = pnand %p1761_p3, %p1758_p2 }
  0x2b   :  { %1766 = shalt.err (!%p1763_p4)
}
  0x2c   :  { %s1767_s0 = scalar_lea.vmem %s48_s28, 4096  ;;  %p1772_p6 = scmp.lt.s32.totalorder %s48_s28, %s48_s28 }
  0x2d   :  { %p1768_p5 = scmp.ne.s32.totalorder %s48_s28, %s1767_s0  ;;  %p1773_p7 = scmp.lt.s32.totalorder %s1767_s0, %s1767_s0 }
  0x2f   :  { %p1774_p8 = por %p1773_p7, %p1772_p6 }
  0x31   :  { %p1775_p9 = pnand %p1774_p8, %p1768_p5 }
  0x33   :  { %1778 = shalt.err (!%p1775_p9)
}
  0x34   :  { %53 = dma.hbm_to_vmem [thread:$0]  %s2210_s3, 4096, %s48_s28, [#allocation6], %s1833_s13, %s1833_s13, %s1834_s14  }
  0x35   :  { %s1779_s20 = scalar_lea.hbm %s2212_s5, 2048 }
  0x36   :  { %p1780_p10 = scmp.ne.s32.totalorder %s2212_s5, %s1779_s20  ;;  %p1783_p11 = scmp.lt.u32.totalorder %s1779_s20, %s2212_s5 }
  0x38   :  { %p1785_p12 = pnand %p1783_p11, %p1780_p10 }
  0x3a   :  { %1788 = shalt.err (!%p1785_p12)
}
  0x3b   :  { %s1789_s1 = scalar_lea.vmem %s1918_s30, 2048  ;;  %p1794_p0 = scmp.lt.s32.totalorder %s1918_s30, %s1918_s30 }
  0x3c   :  { %p1790_p13 = scmp.ne.s32.totalorder %s1918_s30, %s1789_s1  ;;  %p1795_p1 = scmp.lt.s32.totalorder %s1789_s1, %s1789_s1 }
  0x3e   :  { %p1796_p2 = por %p1795_p1, %p1794_p0 }
  0x40   :  { %p1797_p3 = pnand %p1796_p2, %p1790_p13 }
  0x42   :  { %1800 = shalt.err (!%p1797_p3)
}
  0x43   :  { %67 = dma.hbm_to_vmem [thread:$0]  %s2212_s5, 2048, %s1918_s30, [#allocation9], %s1833_s13, %s1833_s13, %s1834_s14  }
  0x44   :  { %1823 = dma.done.wait [#allocation3], 256  }
  0x45   :  { %1824 = vsyncadd [#allocation3], 4294967040 }
  0x46   :  { %1825 = dma.done.wait [#allocation6], 8192  }
  0x47   :  { %1826 = vsyncadd [#allocation6], 4294959104 }
  0x48   :  { %1827 = dma.done.wait [#allocation9], 2048  }
  0x49   :  { %1828 = vsyncadd [#allocation9], 4294965248  ;;  %v1837_v0 = vmov 0.0|0.0   ;;  %vm1838_vm0 = vmmov 0   ;;  %v1839_v1 = vmov 0.0   ;;  %v84_v2 = vld [vmem:[#allocation5] sm:$0xff] }
  0x4a   :  { %1463 = vmatprep.subr.bf16.mxu0 %v1837_v0  ;;  %1145 = vmatprep.mubr.msk.f32.mxu0 %vm1838_vm0, %v1839_v1  ;;  %v85_v3 = vld [vmem:[#allocation5 + $0x8] sm:$0xff]  ;;  %v86_v4 = vld [vmem:[#allocation5 + $0x10] sm:$0xff]  ;;  %v87_v6 = vld [vmem:[#allocation5 + $0x18] sm:$0xff] }
  0x4b   :  { %1487 = vmatprep.subr.bf16.mxu1 %v1837_v0  ;;  %1180 = vmatprep.mubr.msk.f32.mxu1 %vm1838_vm0, %v1839_v1  ;;  %v1961_v5 = vpack.c.bf16 %v85_v3, %v84_v2  ;;  %v1964_v7 = vpack.c.bf16 %v87_v6, %v86_v4  ;;  %v88_v8 = vld [vmem:[#allocation5 + $0x20] sm:$0xff]  ;;  %v89_v9 = vld [vmem:[#allocation5 + $0x28] sm:$0xff]  ;;  %v180_v12 = vld [vmem:[#allocation7 + $0x10] sm:$0xff] }
  0x4c   :  { %v178_v10 = vld [vmem:[#allocation7] sm:$0xff]  ;;  %v179_v11 = vld [vmem:[#allocation7 + $0x8] sm:$0xff]  ;;  %v1968_v13 = vpack.c.bf16 %v89_v9, %v88_v8  ;;  %v181_v15 = vld [vmem:[#allocation7 + $0x18] sm:$0xff] }
  0x4d   :  { %1465 = vmatpush3.bf16.msra.mxu0 %v1961_v5  ;;  %v1970_v14 = vpack.c.bf16 %v179_v11, %v178_v10  ;;  %v90_v16 = vld [vmem:[#allocation5 + $0x30] sm:$0xff]  ;;  %v91_v17 = vld [vmem:[#allocation5 + $0x38] sm:$0xff]  ;;  %v1974_v18 = vpack.c.bf16 %v181_v15, %v180_v12  ;;  %v182_v19 = vld [vmem:[#allocation7 + $0x20] sm:$0xff] }
  0x4e   :  { %1466 = vmatprep.subr.bf16.mxu0 %v1837_v0  ;;  %v183_v20 = vld [vmem:[#allocation7 + $0x28] sm:$0xff]  ;;  %v1473_v21 = vpack.c.bf16 %v91_v17, %v90_v16  ;;  %v92_v22 = vld [vmem:[#allocation5 + $0x40] sm:$0xff]  ;;  %v184_v25 = vld [vmem:[#allocation7 + $0x30] sm:$0xff] }
  0x4f   :  { %1489 = vmatpush3.bf16.msra.mxu1 %v1970_v14  ;;  %v93_v23 = vld [vmem:[#allocation5 + $0x48] sm:$0xff]  ;;  %v1980_v24 = vpack.c.bf16 %v183_v20, %v182_v19  ;;  %v185_v26 = vld [vmem:[#allocation7 + $0x38] sm:$0xff]  ;;  %v94_v28 = vld [vmem:[#allocation5 + $0x50] sm:$0xff] }
  0x50   :  { %1490 = vmatprep.subr.bf16.mxu1 %v1837_v0  ;;  %v1476_v27 = vpack.c.bf16 %v93_v23, %v92_v22  ;;  %v95_v29 = vld [vmem:[#allocation5 + $0x58] sm:$0xff]  ;;  %v1985_v30 = vpack.c.bf16 %v185_v26, %v184_v25  ;;  %v186_v31 = vld [vmem:[#allocation7 + $0x40] sm:$0xff]  ;;  %v187_v32 = vld [vmem:[#allocation7 + $0x48] sm:$0xff] }
  0x51   :  { %1468 = vmatpush3.bf16.msra.mxu0 %v1964_v7  ;;  %v1479_v33 = vpack.c.bf16 %v95_v29, %v94_v28  ;;  %v96_v34 = vld [vmem:[#allocation5 + $0x60] sm:$0xff]  ;;  %v97_v35 = vld [vmem:[#allocation5 + $0x68] sm:$0xff]  ;;  %v1990_v36 = vpack.c.bf16 %v187_v32, %v186_v31  ;;  %v188_v37 = vld [vmem:[#allocation7 + $0x50] sm:$0xff] }
  0x52   :  { %1469 = vmatprep.subr.bf16.mxu0 %v1837_v0  ;;  %v189_v38 = vld [vmem:[#allocation7 + $0x58] sm:$0xff]  ;;  %v1482_v39 = vpack.c.bf16 %v97_v35, %v96_v34  ;;  %v98_v40 = vld [vmem:[#allocation5 + $0x70] sm:$0xff]  ;;  %v190_v43 = vld [vmem:[#allocation7 + $0x60] sm:$0xff] }
  0x53   :  { %1492 = vmatpush3.bf16.msra.mxu1 %v1974_v18  ;;  %v99_v41 = vld [vmem:[#allocation5 + $0x78] sm:$0xff]  ;;  %v1995_v42 = vpack.c.bf16 %v189_v38, %v188_v37  ;;  %v191_v44 = vld [vmem:[#allocation7 + $0x68] sm:$0xff]  ;;  %v2003_v47 = vld [vmem:[#allocation2] sm:$0xff] }
  0x54   :  { %1493 = vmatprep.subr.bf16.mxu1 %v1837_v0  ;;  %v1485_v45 = vpack.c.bf16 %v99_v41, %v98_v40  ;;  %v2000_v46 = vpack.c.bf16 %v191_v44, %v190_v43  ;;  %v2021_v48 = vld [vmem:[#allocation2 + $0x8] sm:$0xff]  ;;  %v192_v49 = vld [vmem:[#allocation7 + $0x70] sm:$0xff]  ;;  %v417_v52 = vld [vmem:[#allocation5 + $0x80] sm:$0xff] }
  0x55   :  { %1471 = vmatpush3.bf16.msra.mxu0 %v1968_v13  ;;  %v193_v50 = vld [vmem:[#allocation7 + $0x78] sm:$0xff]  ;;  %v418_v53 = vld [vmem:[#allocation5 + $0x88] sm:$0xff]  ;;  %v419_v54 = vld [vmem:[#allocation5 + $0x90] sm:$0xff] }
  0x56   :  { %1472 = vmatprep.subr.bf16.mxu0 %v1837_v0  ;;  %v1509_v51 = vpack.c.bf16 %v193_v50, %v192_v49  ;;  %v2028_v55 = vpack.c.bf16 %v418_v53, %v417_v52  ;;  %v420_v56 = vld [vmem:[#allocation5 + $0x98] sm:$0xff]  ;;  %v421_v58 = vld [vmem:[#allocation5 + $0xa0] sm:$0xff]  ;;  %v422_v59 = vld [vmem:[#allocation5 + $0xa8] sm:$0xff] }
  0x57   :  { %1495 = vmatpush3.bf16.msra.mxu1 %v1980_v24  ;;  %v2031_v57 = vpack.c.bf16 %v420_v56, %v419_v54  ;;  %v2035_v60 = vpack.c.bf16 %v422_v59, %v421_v58  ;;  %v423_v61 = vld [vmem:[#allocation5 + $0xb0] sm:$0xff]  ;;  %v424_v62 = vld [vmem:[#allocation5 + $0xb8] sm:$0xff]  ;;  %v425_v2 = vld [vmem:[#allocation5 + $0xc0] sm:$0xff] }
  0x58   :  { %1496 = vmatprep.subr.bf16.mxu1 %v1837_v0  ;;  %v2039_v63 = vpack.c.bf16 %v424_v62, %v423_v61  ;;  %v426_v3 = vld [vmem:[#allocation5 + $0xc8] sm:$0xff]  ;;  %v428_v6 = vld [vmem:[#allocation5 + $0xd8] sm:$0xff]  ;;  %v936_v8 = vld [vmem:[%s2209_s2] ss:$0 sm:$0xff] }
  0x59   :  { %1474 = vmatpush3.bf16.msra.mxu0 %v1473_v21  ;;  %v2043_v4 = vpack.c.bf16 %v426_v3, %v425_v2  ;;  %v429_v17 = vld [vmem:[#allocation5 + $0xe0] sm:$0xff]  ;;  %v431_v20 = vld [vmem:[#allocation5 + $0xf0] sm:$0xff]  ;;  %v753_v59 = vld [vmem:[#allocation8 + $0x8] sm:$0xff] }
  0x5a   :  { %1475 = vmatprep.subr.bf16.mxu0 %v1837_v0  ;;  %v513_v23 = vld [vmem:[#allocation7 + $0x80] sm:$0xff]  ;;  %v515_v25 = vld [vmem:[#allocation7 + $0x90] sm:$0xff]  ;;  %v755_v62 = vld [vmem:[#allocation8 + $0x18] sm:$0xff] }
  0x5b   :  { %1498 = vmatpush3.bf16.msra.mxu1 %v1985_v30  ;;  %v517_v29 = vld [vmem:[#allocation7 + $0xa0] sm:$0xff]  ;;  %v519_v32 = vld [vmem:[#allocation7 + $0xb0] sm:$0xff]  ;;  %v757_v3 = vld [vmem:[#allocation8 + $0x28] sm:$0xff] }
  0x5c   :  { %1499 = vmatprep.subr.bf16.mxu1 %v1837_v0  ;;  %v521_v35 = vld [vmem:[#allocation7 + $0xc0] sm:$0xff]  ;;  %v523_v38 = vld [vmem:[#allocation7 + $0xd0] sm:$0xff] }
  0x5d   :  { %1477 = vmatpush3.bf16.msra.mxu0 %v1476_v27  ;;  %v525_v41 = vld [vmem:[#allocation7 + $0xe0] sm:$0xff]  ;;  %v937_v44 = vld [vmem:[%s2211_s4] ss:$0 sm:$0xff] }
  0x5e   :  { %1478 = vmatprep.subr.bf16.mxu0 %v1837_v0  ;;  %v527_v56 = vld [vmem:[#allocation7 + $0xf0] sm:$0xff]  ;;  %v756_v2 = vld [vmem:[#allocation8 + $0x20] sm:$0xff] }
  0x5f   :  { %1501 = vmatpush3.bf16.msra.mxu1 %v1990_v36 }
  0x60   :  { %1502 = vmatprep.subr.bf16.mxu1 %v1837_v0 }
  0x61   :  { %1480 = vmatpush3.bf16.msra.mxu0 %v1479_v33 }
  0x62   :  { %1481 = vmatprep.subr.bf16.mxu0 %v1837_v0 }
  0x63   :  { %1504 = vmatpush3.bf16.msra.mxu1 %v1995_v42 }
  0x64   :  { %1505 = vmatprep.subr.bf16.mxu1 %v1837_v0 }
  0x65   :  { %1483 = vmatpush3.bf16.msra.mxu0 %v1482_v39 }
  0x66   :  { %1484 = vmatprep.subr.bf16.mxu0 %v1837_v0 }
  0x67   :  { %1507 = vmatpush3.bf16.msra.mxu1 %v2000_v46 }
  0x68   :  { %1508 = vmatprep.subr.bf16.mxu1 %v1837_v0 }
  0x69   :  { %1486 = vmatpush3.bf16.msra.mxu0 %v1485_v45 }
  0x6a   :  { %1511 = vmatprep.subr.bf16.mxu0 %v1837_v0 }
  0x6b   :  { %1510 = vmatpush3.bf16.msra.mxu1 %v1509_v51 }
  0x6c   :  { %1146 = vmatmul.mubr.f32.vlgmr.msra.gmra.mrb[0].mxu0 %v2003_v47  ;;  %1535 = vmatprep.subr.bf16.mxu1 %v1837_v0 }
  0x6d   :  { %1513 = vmatpush3.bf16.msra.mxu0 %v1961_v5  ;;  %1215 = vmatprep.mubr.msk.f32.mxu0 %vm1838_vm0, %v1839_v1  ;;  %v427_v5 = vld [vmem:[#allocation5 + $0xd0] sm:$0xff] }
  0x6e   :  { %1514 = vmatprep.subr.bf16.mxu0 %v1837_v0 }
  0x71   :  { %1516 = vmatpush3.bf16.msra.mxu0 %v1964_v7  ;;  %v2047_v7 = vpack.c.bf16 %v428_v6, %v427_v5  ;;  %v758_v5 = vld [vmem:[#allocation8 + $0x30] sm:$0xff]  ;;  %v759_v6 = vld [vmem:[#allocation8 + $0x38] sm:$0xff] }
  0x72   :  { %1517 = vmatprep.subr.bf16.mxu0 %v1837_v0 }
  0x75   :  { %1519 = vmatpush3.bf16.msra.mxu0 %v1968_v13 }
  0x76   :  { %1520 = vmatprep.subr.bf16.mxu0 %v1837_v0 }
  0x79   :  { %1522 = vmatpush3.bf16.msra.mxu0 %v1473_v21  ;;  %v432_v21 = vld [vmem:[#allocation5 + $0xf8] sm:$0xff] }
  0x7a   :  { %1523 = vmatprep.subr.bf16.mxu0 %v1837_v0  ;;  %v2078_v22 = vpack.c.bf16 %v432_v21, %v431_v20 }
  0x7d   :  { %1525 = vmatpush3.bf16.msra.mxu0 %v1476_v27  ;;  %v516_v27 = vld [vmem:[#allocation7 + $0x98] sm:$0xff] }
  0x7e   :  { %1526 = vmatprep.subr.bf16.mxu0 %v1837_v0  ;;  %v2085_v28 = vpack.c.bf16 %v516_v27, %v515_v25  ;;  %v766_v25 = vld [vmem:[#allocation8 + $0x70] sm:$0xff] }
  0x81   :  { %1528 = vmatpush3.bf16.msra.mxu0 %v1479_v33  ;;  %v520_v33 = vld [vmem:[#allocation7 + $0xb8] sm:$0xff] }
  0x82   :  { %1529 = vmatprep.subr.bf16.mxu0 %v1837_v0  ;;  %v2093_v34 = vpack.c.bf16 %v520_v33, %v519_v32 }
  0x85   :  { %1531 = vmatpush3.bf16.msra.mxu0 %v1482_v39  ;;  %v524_v39 = vld [vmem:[#allocation7 + $0xd8] sm:$0xff] }
  0x86   :  { %1532 = vmatprep.subr.bf16.mxu0 %v1837_v0  ;;  %v2101_v40 = vpack.c.bf16 %v524_v39, %v523_v38  ;;  %v942_v38 = vld [vmem:[%s2213_s6] ss:$0 sm:$0xff] }
  0x89   :  { %1534 = vmatpush3.bf16.msra.mxu0 %v1485_v45 }
  0x8a   :  { %1559 = vmatprep.subr.bf16.mxu0 %v1837_v0 }
  0x8c   :  { %1216 = vmatmul.mubr.f32.vlgmr.msra.gmra.mrb[2].mxu0 %v2021_v48 }
  0x8d   :  { %1285 = vmatprep.mubr.msk.f32.mxu0 %vm1838_vm0, %v1839_v1  ;;  %1561 = vmatpush3.bf16.msra.mxu0 %v2028_v55 }
  0x8e   :  { %1562 = vmatprep.subr.bf16.mxu0 %v1837_v0 }
  0x91   :  { %1564 = vmatpush3.bf16.msra.mxu0 %v2031_v57 }
  0x92   :  { %1565 = vmatprep.subr.bf16.mxu0 %v1837_v0 }
  0x95   :  { %1567 = vmatpush3.bf16.msra.mxu0 %v2035_v60 }
  0x96   :  { %1568 = vmatprep.subr.bf16.mxu0 %v1837_v0 }
  0x99   :  { %1570 = vmatpush3.bf16.msra.mxu0 %v2039_v63 }
  0x9a   :  { %1571 = vmatprep.subr.bf16.mxu0 %v1837_v0 }
  0x9d   :  { %1573 = vmatpush3.bf16.msra.mxu0 %v2043_v4 }
  0x9e   :  { %1574 = vmatprep.subr.bf16.mxu0 %v1837_v0 }
  0xa1   :  { %1576 = vmatpush3.bf16.msra.mxu0 %v2047_v7 }
  0xa2   :  { %1577 = vmatprep.subr.bf16.mxu0 %v1837_v0 }
 0x13f   :  { %v173_v9 = vpop.f32.mrb[0].mxu0 }
 0x140   :  { %v174_v10 = vadd.f32 %v936_v8, %v173_v9  ;;  %v1147_v11 = vpop.f32.mrb[1].mxu0  ;;  %v761_v9 = vld [vmem:[#allocation8 + $0x48] sm:$0xff] }
 0x141   :  { %v762_v11 = vld [vmem:[#allocation8 + $0x50] sm:$0xff] }
 0x142   :  { %v177_v12 = vmax.f32 %v174_v10, 0.0 }
 0x144   :  { %1181 = vmatmul.mubr.f32.vlgmr.msra.gmra.mrb[0].mxu1 %v177_v12  ;;  %v763_v12 = vld [vmem:[#allocation8 + $0x58] sm:$0xff] }
 0x145   :  { %1537 = vmatpush3.bf16.msra.mxu1 %v1970_v14  ;;  %1250 = vmatprep.mubr.msk.f32.mxu1 %vm1838_vm0, %v1839_v1 }
 0x146   :  { %1538 = vmatprep.subr.bf16.mxu1 %v1837_v0 }
 0x149   :  { %1540 = vmatpush3.bf16.msra.mxu1 %v1974_v18  ;;  %v430_v18 = vld [vmem:[#allocation5 + $0xe8] sm:$0xff] }
 0x14a   :  { %1541 = vmatprep.subr.bf16.mxu1 %v1837_v0  ;;  %v2074_v19 = vpack.c.bf16 %v430_v18, %v429_v17 }
 0x14c   :  { %1579 = vmatpush3.bf16.msra.mxu0 %v2074_v19 }
 0x14d   :  { %1543 = vmatpush3.bf16.msra.mxu1 %v1980_v24  ;;  %1580 = vmatprep.subr.bf16.mxu0 %v1837_v0  ;;  %v514_v24 = vld [vmem:[#allocation7 + $0x88] sm:$0xff] }
 0x14e   :  { %1544 = vmatprep.subr.bf16.mxu1 %v1837_v0  ;;  %v2082_v26 = vpack.c.bf16 %v514_v24, %v513_v23  ;;  %v764_v23 = vld [vmem:[#allocation8 + $0x60] sm:$0xff]  ;;  %v765_v24 = vld [vmem:[#allocation8 + $0x68] sm:$0xff] }
 0x150   :  { %1582 = vmatpush3.bf16.msra.mxu0 %v2078_v22 }
 0x151   :  { %1546 = vmatpush3.bf16.msra.mxu1 %v1985_v30  ;;  %1607 = vmatprep.subr.bf16.mxu0 %v1837_v0  ;;  %v518_v30 = vld [vmem:[#allocation7 + $0xa8] sm:$0xff] }
 0x152   :  { %1547 = vmatprep.subr.bf16.mxu1 %v1837_v0  ;;  %v2089_v31 = vpack.c.bf16 %v518_v30, %v517_v29 }
 0x155   :  { %1549 = vmatpush3.bf16.msra.mxu1 %v1990_v36  ;;  %v522_v36 = vld [vmem:[#allocation7 + $0xc8] sm:$0xff] }
 0x156   :  { %1550 = vmatprep.subr.bf16.mxu1 %v1837_v0  ;;  %v2097_v37 = vpack.c.bf16 %v522_v36, %v521_v35 }
 0x159   :  { %1552 = vmatpush3.bf16.msra.mxu1 %v1995_v42  ;;  %v526_v42 = vld [vmem:[#allocation7 + $0xe8] sm:$0xff] }
 0x15a   :  { %1553 = vmatprep.subr.bf16.mxu1 %v1837_v0  ;;  %v2105_v43 = vpack.c.bf16 %v526_v42, %v525_v41 }
 0x15d   :  { %1555 = vmatpush3.bf16.msra.mxu1 %v2000_v46 }
 0x15e   :  { %1556 = vmatprep.subr.bf16.mxu1 %v1837_v0 }
 0x15f   :  { %v339_v13 = vpop.f32.mrb[2].mxu0 }
 0x160   :  { %v340_v14 = vadd.f32 %v936_v8, %v339_v13  ;;  %v1217_v15 = vpop.f32.mrb[3].mxu0  ;;  %v760_v8 = vld [vmem:[#allocation8 + $0x40] sm:$0xff]  ;;  %v1671_v13 = vpack.c.bf16 %v763_v12, %v762_v11 }
 0x161   :  { %1558 = vmatpush3.bf16.msra.mxu1 %v1509_v51  ;;  %v1668_v10 = vpack.c.bf16 %v761_v9, %v760_v8 }
 0x162   :  { %v343_v16 = vmax.f32 %v340_v14, 0.0  ;;  %1583 = vmatprep.subr.bf16.mxu1 %v1837_v0  ;;  %v939_v14 = vld [vmem:[%s2209_s2 + $0x1] ss:$0 sm:$0xff] }
 0x164   :  { %1251 = vmatmul.mubr.f32.vlgmr.msra.gmra.mrb[2].mxu1 %v343_v16 }
 0x165   :  { %1320 = vmatprep.mubr.msk.f32.mxu1 %vm1838_vm0, %v1839_v1  ;;  %1585 = vmatpush3.bf16.msra.mxu1 %v2082_v26 }
 0x166   :  { %1586 = vmatprep.subr.bf16.mxu1 %v1837_v0 }
 0x169   :  { %1588 = vmatpush3.bf16.msra.mxu1 %v2085_v28 }
 0x16a   :  { %1589 = vmatprep.subr.bf16.mxu1 %v1837_v0 }
 0x16d   :  { %1591 = vmatpush3.bf16.msra.mxu1 %v2089_v31 }
 0x16e   :  { %1592 = vmatprep.subr.bf16.mxu1 %v1837_v0 }
 0x171   :  { %1594 = vmatpush3.bf16.msra.mxu1 %v2093_v34 }
 0x172   :  { %1595 = vmatprep.subr.bf16.mxu1 %v1837_v0 }
 0x175   :  { %1597 = vmatpush3.bf16.msra.mxu1 %v2097_v37 }
 0x176   :  { %1598 = vmatprep.subr.bf16.mxu1 %v1837_v0 }
 0x179   :  { %1600 = vmatpush3.bf16.msra.mxu1 %v2101_v40 }
 0x17a   :  { %1601 = vmatprep.subr.bf16.mxu1 %v1837_v0 }
 0x17d   :  { %1603 = vmatpush3.bf16.msra.mxu1 %v2105_v43 }
 0x17e   :  { %1604 = vmatprep.subr.bf16.mxu1 %v1837_v0 }
 0x217   :  { %v267_v45 = vpop.f32.mrb[0].mxu1 }
 0x218   :  { %v268_v46 = vadd.f32 %v937_v44, %v267_v45  ;;  %v1182_v49 = vpop.f32.mrb[1].mxu1 }
 0x21a   :  { %v2114_v50 = vadd.f32 %v268_v46, %v2003_v47 }
 0x21c   :  { %v272_v51 = vmax.f32 %v2114_v50, 0.0 }
 0x21e   :  { %1286 = vmatmul.mubr.f32.vlgmr.msra.gmra.mrb[4].mxu0 %v272_v51 }
 0x21f   :  { %1609 = vmatpush3.bf16.msra.mxu0 %v2028_v55  ;;  %1355 = vmatprep.mubr.msk.f32.mxu0 %vm1838_vm0, %v1839_v1 }
 0x220   :  { %1610 = vmatprep.subr.bf16.mxu0 %v1837_v0 }
 0x223   :  { %1612 = vmatpush3.bf16.msra.mxu0 %v2031_v57  ;;  %v528_v57 = vld [vmem:[#allocation7 + $0xf8] sm:$0xff] }
 0x224   :  { %1613 = vmatprep.subr.bf16.mxu0 %v1837_v0  ;;  %v1605_v58 = vpack.c.bf16 %v528_v57, %v527_v56 }
 0x226   :  { %1606 = vmatpush3.bf16.msra.mxu1 %v1605_v58 }
 0x227   :  { %1615 = vmatpush3.bf16.msra.mxu0 %v2035_v60  ;;  %1631 = vmatprep.subr.bf16.mxu1 %v1837_v0  ;;  %v754_v60 = vld [vmem:[#allocation8 + $0x10] sm:$0xff] }
 0x228   :  { %1616 = vmatprep.subr.bf16.mxu0 %v1837_v0 }
 0x22b   :  { %1618 = vmatpush3.bf16.msra.mxu0 %v2039_v63  ;;  %v1659_v63 = vpack.c.bf16 %v755_v62, %v754_v60 }
 0x22c   :  { %1619 = vmatprep.subr.bf16.mxu0 %v1837_v0 }
 0x22f   :  { %1621 = vmatpush3.bf16.msra.mxu0 %v2043_v4  ;;  %v1662_v4 = vpack.c.bf16 %v757_v3, %v756_v2 }
 0x230   :  { %1622 = vmatprep.subr.bf16.mxu0 %v1837_v0 }
 0x233   :  { %1624 = vmatpush3.bf16.msra.mxu0 %v2047_v7  ;;  %v1665_v7 = vpack.c.bf16 %v759_v6, %v758_v5 }
 0x234   :  { %1625 = vmatprep.subr.bf16.mxu0 %v1837_v0 }
 0x237   :  { %v410_v47 = vpop.f32.mrb[2].mxu1  ;;  %1627 = vmatpush3.bf16.msra.mxu0 %v2074_v19 }
 0x238   :  { %v411_v52 = vadd.f32 %v937_v44, %v410_v47  ;;  %v1252_v53 = vpop.f32.mrb[3].mxu1  ;;  %1628 = vmatprep.subr.bf16.mxu0 %v1837_v0 }
 0x23a   :  { %v2136_v54 = vadd.f32 %v411_v52, %v2021_v48  ;;  %v752_v48 = vld [vmem:[#allocation8] sm:$0xff] }
 0x23b   :  { %1630 = vmatpush3.bf16.msra.mxu0 %v2078_v22  ;;  %v1656_v61 = vpack.c.bf16 %v753_v59, %v752_v48 }
 0x23c   :  { %v415_v55 = vmax.f32 %v2136_v54, 0.0  ;;  %1655 = vmatprep.subr.bf16.mxu0 %v1837_v0 }
 0x23e   :  { %1356 = vmatmul.mubr.f32.vlgmr.msra.gmra.mrb[6].mxu0 %v415_v55 }
 0x23f   :  { %1425 = vmatprep.mubr.msk.f32.mxu0 %vm1838_vm0, %v1839_v1  ;;  %1657 = vmatpush3.bf16.msra.mxu0 %v1656_v61 }
 0x240   :  { %1658 = vmatprep.subr.bf16.mxu0 %v1837_v0 }
 0x243   :  { %1660 = vmatpush3.bf16.msra.mxu0 %v1659_v63 }
 0x244   :  { %1661 = vmatprep.subr.bf16.mxu0 %v1837_v0 }
 0x247   :  { %1663 = vmatpush3.bf16.msra.mxu0 %v1662_v4 }
 0x248   :  { %1664 = vmatprep.subr.bf16.mxu0 %v1837_v0 }
 0x24b   :  { %1666 = vmatpush3.bf16.msra.mxu0 %v1665_v7 }
 0x24c   :  { %1667 = vmatprep.subr.bf16.mxu0 %v1837_v0 }
 0x24f   :  { %1669 = vmatpush3.bf16.msra.mxu0 %v1668_v10 }
 0x250   :  { %1670 = vmatprep.subr.bf16.mxu0 %v1837_v0 }
 0x253   :  { %1672 = vmatpush3.bf16.msra.mxu0 %v1671_v13 }
 0x254   :  { %1673 = vmatprep.subr.bf16.mxu0 %v1837_v0 }
 0x2f1   :  { %v507_v15 = vpop.f32.mrb[4].mxu0 }
 0x2f2   :  { %v508_v16 = vadd.f32 %v939_v14, %v507_v15  ;;  %v1287_v17 = vpop.f32.mrb[5].mxu0 }
 0x2f4   :  { %v511_v18 = vmax.f32 %v508_v16, 0.0 }
 0x2f6   :  { %1321 = vmatmul.mubr.f32.vlgmr.msra.gmra.mrb[4].mxu1 %v511_v18 }
 0x2f7   :  { %1633 = vmatpush3.bf16.msra.mxu1 %v2082_v26  ;;  %1390 = vmatprep.mubr.msk.f32.mxu1 %vm1838_vm0, %v1839_v1  ;;  %v767_v26 = vld [vmem:[#allocation8 + $0x78] sm:$0xff] }
 0x2f8   :  { %1634 = vmatprep.subr.bf16.mxu1 %v1837_v0  ;;  %v1677_v27 = vpack.c.bf16 %v767_v26, %v766_v25 }
 0x2fb   :  { %1636 = vmatpush3.bf16.msra.mxu1 %v2085_v28  ;;  %v941_v28 = vld [vmem:[%s2211_s4 + $0x1] ss:$0 sm:$0xff]  ;;  %s1840_s4 = smov [#allocation10]  }
 0x2fc   :  { %1637 = vmatprep.subr.bf16.mxu1 %v1837_v0  ;;  %s922_s12 = sshll.u32 %s1840_s4, 4  ;;  %s923_s12 = int_to_ptr.vmem [resolvable:$true] %s922_s12 }
 0x2fd   :  { %s1801_s15 = scalar_lea.vmem %s923_s12, 256  ;;  %p1806_p5 = scmp.lt.s32.totalorder %s923_s12, %s923_s12 }
 0x2fe   :  { %p1802_p4 = scmp.ne.s32.totalorder %s923_s12, %s1801_s15  ;;  %p1807_p6 = scmp.lt.s32.totalorder %s1801_s15, %s1801_s15 }
 0x2ff   :  { %1639 = vmatpush3.bf16.msra.mxu1 %v2089_v31 }
 0x300   :  { %1640 = vmatprep.subr.bf16.mxu1 %v1837_v0  ;;  %p1808_p7 = por %p1807_p6, %p1806_p5 }
 0x302   :  { %p1809_p8 = pnand %p1808_p7, %p1802_p4 }
 0x303   :  { %1642 = vmatpush3.bf16.msra.mxu1 %v2093_v34 }
 0x304   :  { %1643 = vmatprep.subr.bf16.mxu1 %v1837_v0 }
 0x307   :  { %1645 = vmatpush3.bf16.msra.mxu1 %v2097_v37 }
 0x308   :  { %1646 = vmatprep.subr.bf16.mxu1 %v1837_v0 }
 0x30b   :  { %1648 = vmatpush3.bf16.msra.mxu1 %v2101_v40 }
 0x30c   :  { %1649 = vmatprep.subr.bf16.mxu1 %v1837_v0 }
 0x30f   :  { %1651 = vmatpush3.bf16.msra.mxu1 %v2105_v43 }
 0x310   :  { %1652 = vmatprep.subr.bf16.mxu1 %v1837_v0 }
 0x311   :  { %v675_v19 = vpop.f32.mrb[6].mxu0 }
 0x312   :  { %v676_v20 = vadd.f32 %v939_v14, %v675_v19  ;;  %v1357_v21 = vpop.f32.mrb[7].mxu0 }
 0x313   :  { %1654 = vmatpush3.bf16.msra.mxu1 %v1605_v58 }
 0x314   :  { %v679_v22 = vmax.f32 %v676_v20, 0.0  ;;  %1679 = vmatprep.subr.bf16.mxu1 %v1837_v0 }
 0x316   :  { %1391 = vmatmul.mubr.f32.vlgmr.msra.gmra.mrb[6].mxu1 %v679_v22 }
 0x317   :  { %1681 = vmatpush3.bf16.msra.mxu1 %v1656_v61  ;;  %1460 = vmatprep.mubr.msk.f32.mxu1 %vm1838_vm0, %v1839_v1  ;;  %v1674_v1 = vpack.c.bf16 %v765_v24, %v764_v23 }
 0x318   :  { %1682 = vmatprep.subr.bf16.mxu1 %v1837_v0 }
 0x319   :  { %1675 = vmatpush3.bf16.msra.mxu0 %v1674_v1 }
 0x31a   :  { %1676 = vmatprep.subr.bf16.mxu0 %v1837_v0 }
 0x31b   :  { %1684 = vmatpush3.bf16.msra.mxu1 %v1659_v63 }
 0x31c   :  { %1685 = vmatprep.subr.bf16.mxu1 %v1837_v0 }
 0x31d   :  { %1678 = vmatpush3.bf16.msra.mxu0 %v1677_v27 }
 0x31f   :  { %1687 = vmatpush3.bf16.msra.mxu1 %v1662_v4 }
 0x320   :  { %1688 = vmatprep.subr.bf16.mxu1 %v1837_v0 }
 0x323   :  { %1690 = vmatpush3.bf16.msra.mxu1 %v1665_v7 }
 0x324   :  { %1691 = vmatprep.subr.bf16.mxu1 %v1837_v0 }
 0x327   :  { %1693 = vmatpush3.bf16.msra.mxu1 %v1668_v10 }
 0x328   :  { %1694 = vmatprep.subr.bf16.mxu1 %v1837_v0 }
 0x32b   :  { %1696 = vmatpush3.bf16.msra.mxu1 %v1671_v13 }
 0x32c   :  { %1697 = vmatprep.subr.bf16.mxu1 %v1837_v0 }
 0x32f   :  { %1699 = vmatpush3.bf16.msra.mxu1 %v1674_v1 }
 0x330   :  { %1700 = vmatprep.subr.bf16.mxu1 %v1837_v0 }
 0x333   :  { %1702 = vmatpush3.bf16.msra.mxu1 %v1677_v27 }
 0x3c9   :  { %v603_v29 = vpop.f32.mrb[4].mxu1 }
 0x3ca   :  { %v604_v30 = vadd.f32 %v941_v28, %v603_v29  ;;  %v1322_v31 = vpop.f32.mrb[5].mxu1 }
 0x3cc   :  { %v607_v32 = vadd.f32 %v604_v30, %v272_v51 }
 0x3ce   :  { %v608_v33 = vmax.f32 %v607_v32, 0.0 }
 0x3d0   :  { %1426 = vmatmul.mubr.f32.vlgmr.msra.gmra.mrb[8].mxu0 %v608_v33 }
 0x3e9   :  { %v746_v34 = vpop.f32.mrb[6].mxu1 }
 0x3ea   :  { %v747_v35 = vadd.f32 %v941_v28, %v746_v34  ;;  %v1392_v36 = vpop.f32.mrb[7].mxu1 }
 0x3ec   :  { %v750_v0 = vadd.f32 %v747_v35, %v415_v55 }
 0x3ee   :  { %v751_v37 = vmax.f32 %v750_v0, 0.0 }
 0x3f0   :  { %1461 = vmatmul.mubr.f32.vlgmr.msra.gmra.mrb[8].mxu1 %v751_v37 }
 0x4a3   :  { %v841_v39 = vpop.f32.mrb[8].mxu0 }
 0x4a4   :  { %v842_v40 = vadd.f32 %v942_v38, %v841_v39  ;;  %v1427_v41 = vpop.f32.mrb[9].mxu0 }
 0x4a6   :  { %915 = vst [vmem:[#allocation10] sm:$0xff] %v842_v40 }
 0x4c3   :  { %v911_v42 = vpop.f32.mrb[8].mxu1 }
 0x4c4   :  { %v912_v43 = vadd.f32 %v942_v38, %v911_v42  ;;  %v1462_v44 = vpop.f32.mrb[9].mxu1 }
 0x4c6   :  { %916 = vst [vmem:[#allocation10 + $0x8] sm:$0xff] %v912_v43 }
 0x4c7   :  { %1812 = shalt.err (!%p1809_p8)
}
 0x4c8   :  { %s1813_s0 = scalar_lea.hbm %s2214_s7, 256 }
 0x4c9   :  { %p1814_p9 = scmp.ne.s32.totalorder %s2214_s7, %s1813_s0  ;;  %p1817_p10 = scmp.lt.u32.totalorder %s1813_s0, %s2214_s7 }
 0x4cb   :  { %p1819_p11 = pnand %p1817_p10, %p1814_p9 }
 0x4cd   :  { %1822 = shalt.err (!%p1819_p11)
}
 0x4ce   :  { %928 = dma.vmem_to_hbm [thread:$0]  %s923_s12, 256, %s2214_s7, [#allocation4], %s1833_s13, %s1833_s13, %s1834_s14  }
 0x4cf   :  { %1829 = dma.done.wait [#allocation4], 256  }
 0x4d0   :  { %1830 = vsyncadd [#allocation4], 4294967040 }
 0x4d1   :  { %932 = vsyncpa [#allocation3], 1 }
 0x4d2   :  { %933 = vsyncpa [#allocation6], 1 }
 0x4d3   :  { %934 = vsyncpa [#allocation9], 1 }
 0x4d4   :  { %935 = vsyncpa [#allocation4], 1 }

</bundles_post_ra>
